<compile_context>
chip_gen: v5e
topology: v5e:2x2
jax: 0.10.0
libtpu: 0.0.40
codegen_flags: <defaults>
</compile_context>

<pallas_src>
import functools
import math

import jax
import jax.numpy as jnp
from jax.experimental import pallas as pl
from jax.experimental.pallas import tpu as pltpu


def _round_up(x, m):
    return (x + m - 1) // m * m


def _smooth_trunc_kernel(pred_ref, tgt_ref, a_ref, bc_ref, t_ref, *,
                         gamma, eps, c0, c1, block_d, d_valid, needs_mask):
    k = pl.program_id(1)

    @pl.when(k == 0)
    def _init():
        a_ref[...] = jnp.zeros_like(a_ref)
        bc_ref[...] = jnp.zeros_like(bc_ref)
        t_ref[...] = jnp.zeros_like(t_ref)

    p = jax.nn.sigmoid(pred_ref[...].astype(jnp.float32))
    t = tgt_ref[...].astype(jnp.float32)

    pt = p * t                      # -> sum(p*t)            (dice numerator)
    pp = p * p
    bc = pp + t * t                 # -> sum(p*p) + sum(t*t) (dice denominator, fused)

    # trunc_loss: exact reference expression (works for soft targets too).
    #   st  = (0.5 - log(gamma)) + ((t-1)*(1-p)^2 - t*p^2) / (2*gamma^2)
    #   c0  = 0.5 - log(gamma), c1 = 1/(2*gamma^2)  (Python floats)
    one_m_p = 1.0 - p
    ret = jnp.where(t == 1.0, p, one_m_p)
    st = c0 + ((t - 1.0) * (one_m_p * one_m_p) - t * pp) * c1
    stl = jnp.where(ret < gamma, st, -jnp.log(ret + eps))

    if needs_mask:
        col = k * block_d + jax.lax.broadcasted_iota(jnp.int32, p.shape, 1)
        valid = col < d_valid
        zero = jnp.zeros_like(p)
        pt = jnp.where(valid, pt, zero)
        bc = jnp.where(valid, bc, zero)
        stl = jnp.where(valid, stl, zero)

    def lane_fold(x):
        # (block_r, block_d) -> (block_r, 128): vreg-aligned column slices
        # accumulated on the VPU; keeps the XLU out of the hot loop.
        acc = x[:, 0:128]
        for q in range(1, block_d // 128):
            acc = acc + x[:, q * 128:(q + 1) * 128]
        return acc

    a_ref[...] += lane_fold(pt)
    bc_ref[...] += lane_fold(bc)
    t_ref[...] += lane_fold(stl)


def smooth_truncated_loss(pred, target, *, gamma=0.3, eps=1e-3, loss_weight=1.0,
                          block_d=None):
    """pred, target: (N, C, H, W) (or any (N, *)). Returns scalar loss
    (reduction='mean', weight=None, avg_factor=None, mask=None)."""
    # TODO(synk): optional `mask`/`weight`/`avg_factor`/'none'/'sum' reduction
    # paths not implemented (module defaults are None / 'mean').
    n = pred.shape[0]
    pred2 = pred.reshape(n, -1)
    tgt2 = target.reshape(n, -1)          # keep native (narrow) dtype; cast in-kernel
    d = pred2.shape[1]

    # Sublane fold: 8 rows per sample so f32 vregs are full even for tiny N.
    fold = 8 if d % 8 == 0 else 1
    r = n * fold
    dr = d // fold
    predr = pred2.reshape(r, dr)
    tgtr = tgt2.reshape(r, dr)

    # Row blocking: 2 row blocks -> the 'parallel' axis can use both
    # TensorCores on v7x. Respect the sublane granularity of the narrowest
    # input dtype (8 for 4B, 16 for 2B, 32 for 1B).
    sub = max(32 // predr.dtype.itemsize, 32 // tgtr.dtype.itemsize)
    block_r = r // 2 if (r % (2 * sub) == 0) else r

    # Lane blocking: big lane-aligned tiles, bounded so inputs (x2 pipeline
    # buffers) + f32 elementwise temporaries stay well inside scoped VMEM on
    # every generation (v5e 16 MiB default, v7x 64 MiB physical).
    if block_d is None:
        max_tile_elems = 128 * 1024
        block_d = max(128, (max_tile_elems // block_r) // 128 * 128)
    block_d = min(_round_up(block_d, 128), _round_up(dr, 128))
    dr_pad = _round_up(dr, block_d)
    needs_mask = dr_pad != dr
    if needs_mask:
        predr = jnp.pad(predr, ((0, 0), (0, dr_pad - dr)))
        tgtr = jnp.pad(tgtr, ((0, 0), (0, dr_pad - dr)))

    kernel = functools.partial(
        _smooth_trunc_kernel,
        gamma=float(gamma), eps=float(eps),
        c0=0.5 - math.log(float(gamma)),
        c1=1.0 / (2.0 * float(gamma) * float(gamma)),
        block_d=block_d, d_valid=dr, needs_mask=needs_mask)

    grid = (r // block_r, dr_pad // block_d)
    out_shape = [jax.ShapeDtypeStruct((r, 128), jnp.float32) for _ in range(3)]

    a_p, bc_p, t_p = pl.pallas_call(
        kernel,
        out_shape=out_shape,
        grid_spec=pltpu.PrefetchScalarGridSpec(
            num_scalar_prefetch=0,
            grid=grid,
            in_specs=[
                pl.BlockSpec((block_r, block_d), lambda i, k: (i, k)),
                pl.BlockSpec((block_r, block_d), lambda i, k: (i, k)),
            ],
            out_specs=[pl.BlockSpec((block_r, 128), lambda i, k: (i, 0))
                       for _ in range(3)],
        ),
        compiler_params=pltpu.CompilerParams(
            dimension_semantics=("parallel", "arbitrary"),
            vmem_limit_bytes=48 * 1024 * 1024),
    )(predr, tgtr)

    # Tiny finalize in plain JAX: fold lanes, fold the 8 sub-rows per sample.
    a = a_p.sum(axis=1).reshape(n, fold).sum(axis=1)
    bc = bc_p.sum(axis=1).reshape(n, fold).sum(axis=1)
    ts = t_p.sum(axis=1).reshape(n, fold).sum(axis=1)

    dice = 1.0 - 2.0 * a / (bc + 2.0 * eps)
    trunc = ts / jnp.float32(d)
    return loss_weight * (jnp.mean(dice) + jnp.mean(trunc))


def _reference(pred, target, *, gamma=0.3, eps=1e-3, loss_weight=1.0):
    n = pred.shape[0]
    p = jax.nn.sigmoid(pred.reshape(n, -1).astype(jnp.float32))
    t = target.reshape(n, -1).astype(jnp.float32)
    a = jnp.sum(p * t, 1)
    b = jnp.sum(p * p, 1) + eps
    c = jnp.sum(t * t, 1) + eps
    dice = jnp.mean(1.0 - 2.0 * a / (b + c))
    ret = jnp.where(t == 1.0, p, 1.0 - p)
    st = 0.5 - jnp.log(gamma) + ((t - 1.0) * (1.0 - p) ** 2 - t * p ** 2) / (2.0 * gamma ** 2)
    stl = jnp.where(ret < gamma, st, -jnp.log(ret + eps))
    trunc = jnp.mean(jnp.mean(stl, axis=1))
    return loss_weight * (dice + trunc)


if __name__ == "__main__":
    key = jax.random.PRNGKey(0)
    k1, k2 = jax.random.split(key)
    # Small segmentation-head-like shapes: N=2, C=4, H=W=16 -> D=1024.
    pred = jax.random.normal(k1, (2, 4, 16, 16), dtype=jnp.float32)
    # Target fed as bf16 (exact for {0,1}) to halve its HBM traffic.
    target = (jax.random.uniform(k2, (2, 4, 16, 16)) > 0.5).astype(jnp.bfloat16)

    loss = smooth_truncated_loss(pred, target, gamma=0.3, eps=1e-3, loss_weight=1.0)
    loss = jax.block_until_ready(loss)

    ref = _reference(pred, target, gamma=0.3, eps=1e-3, loss_weight=1.0)
    assert jnp.allclose(loss, ref, rtol=5e-5, atol=5e-5), (loss, ref)
    print("KERNEL_OK")
</pallas_src>

<mosaic_0001>
module attributes {stable_mosaic.version = 11 : i64} {
  func.func @_smooth_trunc_kernel(%arg0: i32, %arg1: i32, %arg2: memref<16x128xf32, #tpu.memory_space<vmem>>, %arg3: memref<16x128xbf16, #tpu.memory_space<vmem>>, %arg4: memref<16x128xf32, #tpu.memory_space<vmem>>, %arg5: memref<16x128xf32, #tpu.memory_space<vmem>>, %arg6: memref<16x128xf32, #tpu.memory_space<vmem>>) attributes {dimension_semantics = [#tpu.dimension_semantics<parallel>, #tpu.dimension_semantics<arbitrary>], iteration_bounds = array<i64: 1, 1>, scalar_prefetch = 0 : i64, scratch_operands = 0 : i64, tpu.core_type = #tpu.core_type<tc>, window_params = [{transform_indices = @transform_0, window_bounds = array<i64: 16, 128>}, {transform_indices = @transform_1, window_bounds = array<i64: 16, 128>}, {transform_indices = @transform_2, window_bounds = array<i64: 16, 128>}, {transform_indices = @transform_3, window_bounds = array<i64: 16, 128>}, {transform_indices = @transform_4, window_bounds = array<i64: 16, 128>}]} {
    %c0_i32 = arith.constant 0 : i32
    %0 = arith.cmpi eq, %arg1, %c0_i32 : i32
    %1 = arith.extui %0 : i1 to i32
    %c0_i32_0 = arith.constant 0 : i32
    %2 = arith.cmpi ne, %1, %c0_i32_0 : i32
    scf.if %2 {
      %cst_24 = arith.constant 0.000000e+00 : f32
      %47 = vector.broadcast %cst_24 : f32 to vector<16x128xf32>
      %c0_25 = arith.constant 0 : index
      %c0_26 = arith.constant 0 : index
      %48 = vector.load %arg4[%c0_25, %c0_26] : memref<16x128xf32, #tpu.memory_space<vmem>>, vector<16x128xf32>
      tpu.vector_store %arg4[%c0_25, %c0_26], %47 {strides = array<i32>} : memref<16x128xf32, #tpu.memory_space<vmem>>, vector<16x128xf32>,
      %cst_27 = arith.constant 0.000000e+00 : f32
      %49 = vector.broadcast %cst_27 : f32 to vector<16x128xf32>
      %c0_28 = arith.constant 0 : index
      %c0_29 = arith.constant 0 : index
      %50 = vector.load %arg5[%c0_28, %c0_29] : memref<16x128xf32, #tpu.memory_space<vmem>>, vector<16x128xf32>
      tpu.vector_store %arg5[%c0_28, %c0_29], %49 {strides = array<i32>} : memref<16x128xf32, #tpu.memory_space<vmem>>, vector<16x128xf32>,
      %cst_30 = arith.constant 0.000000e+00 : f32
      %51 = vector.broadcast %cst_30 : f32 to vector<16x128xf32>
      %c0_31 = arith.constant 0 : index
      %c0_32 = arith.constant 0 : index
      %52 = vector.load %arg6[%c0_31, %c0_32] : memref<16x128xf32, #tpu.memory_space<vmem>>, vector<16x128xf32>
      tpu.vector_store %arg6[%c0_31, %c0_32], %51 {strides = array<i32>} : memref<16x128xf32, #tpu.memory_space<vmem>>, vector<16x128xf32>,
    } else {
    }
    %c0 = arith.constant 0 : index
    %c0_1 = arith.constant 0 : index
    %3 = vector.load %arg2[%c0, %c0_1] : memref<16x128xf32, #tpu.memory_space<vmem>>, vector<16x128xf32>
    %4 = arith.negf %3 : vector<16x128xf32>
    %5 = math.exp %4 : vector<16x128xf32>
    %cst = arith.constant 1.000000e+00 : f32
    %6 = vector.broadcast %cst : f32 to vector<16x128xf32>
    %7 = arith.addf %6, %5 : vector<16x128xf32>
    %8 = arith.divf %6, %7 : vector<16x128xf32>
    %c0_2 = arith.constant 0 : index
    %c0_3 = arith.constant 0 : index
    %9 = vector.load %arg3[%c0_2, %c0_3] : memref<16x128xbf16, #tpu.memory_space<vmem>>, vector<16x128xbf16>
    %10 = arith.extf %9 : vector<16x128xbf16> to vector<16x128xf32>
    %11 = arith.mulf %8, %10 : vector<16x128xf32>
    %12 = arith.mulf %8, %8 : vector<16x128xf32>
    %13 = arith.mulf %10, %10 : vector<16x128xf32>
    %14 = arith.addf %12, %13 : vector<16x128xf32>
    %cst_4 = arith.constant 1.000000e+00 : f32
    %15 = vector.broadcast %cst_4 : f32 to vector<16x128xf32>
    %16 = arith.subf %15, %8 : vector<16x128xf32>
    %cst_5 = arith.constant 1.000000e+00 : f32
    %17 = vector.broadcast %cst_5 : f32 to vector<16x128xf32>
    %18 = arith.cmpf oeq, %10, %17 : vector<16x128xf32>
    %19 = arith.select %18, %8, %16 : vector<16x128xi1>, vector<16x128xf32>
    %cst_6 = arith.constant 1.000000e+00 : f32
    %20 = vector.broadcast %cst_6 : f32 to vector<16x128xf32>
    %21 = arith.subf %10, %20 : vector<16x128xf32>
    %22 = arith.mulf %16, %16 : vector<16x128xf32>
    %23 = arith.mulf %21, %22 : vector<16x128xf32>
    %24 = arith.mulf %10, %12 : vector<16x128xf32>
    %25 = arith.subf %23, %24 : vector<16x128xf32>
    %cst_7 = arith.constant 5.55555534 : f32
    %26 = vector.broadcast %cst_7 : f32 to vector<16x128xf32>
    %27 = arith.mulf %25, %26 : vector<16x128xf32>
    %cst_8 = arith.constant 1.70397282 : f32
    %28 = vector.broadcast %cst_8 : f32 to vector<16x128xf32>
    %29 = arith.addf %28, %27 : vector<16x128xf32>
    %cst_9 = arith.constant 3.000000e-01 : f32
    %30 = vector.broadcast %cst_9 : f32 to vector<16x128xf32>
    %31 = arith.cmpf olt, %19, %30 : vector<16x128xf32>
    %cst_10 = arith.constant 1.000000e-03 : f32
    %32 = vector.broadcast %cst_10 : f32 to vector<16x128xf32>
    %33 = arith.addf %19, %32 : vector<16x128xf32>
    %34 = math.log %33 : vector<16x128xf32>
    %cst_11 = arith.constant 0.000000e+00 : f32
    %35 = vector.broadcast %cst_11 : f32 to vector<16x128xf32>
    %36 = arith.subf %35, %34 : vector<16x128xf32>
    %37 = arith.select %31, %29, %36 : vector<16x128xi1>, vector<16x128xf32>
    %c0_12 = arith.constant 0 : index
    %c0_13 = arith.constant 0 : index
    %38 = vector.load %arg4[%c0_12, %c0_13] : memref<16x128xf32, #tpu.memory_space<vmem>>, vector<16x128xf32>
    %39 = arith.addf %38, %11 : vector<16x128xf32>
    %c0_14 = arith.constant 0 : index
    %c0_15 = arith.constant 0 : index
    %40 = vector.load %arg4[%c0_14, %c0_15] : memref<16x128xf32, #tpu.memory_space<vmem>>, vector<16x128xf32>
    tpu.vector_store %arg4[%c0_14, %c0_15], %39 {strides = array<i32>} : memref<16x128xf32, #tpu.memory_space<vmem>>, vector<16x128xf32>,
    %c0_16 = arith.constant 0 : index
    %c0_17 = arith.constant 0 : index
    %41 = vector.load %arg5[%c0_16, %c0_17] : memref<16x128xf32, #tpu.memory_space<vmem>>, vector<16x128xf32>
    %42 = arith.addf %41, %14 : vector<16x128xf32>
    %c0_18 = arith.constant 0 : index
    %c0_19 = arith.constant 0 : index
    %43 = vector.load %arg5[%c0_18, %c0_19] : memref<16x128xf32, #tpu.memory_space<vmem>>, vector<16x128xf32>
    tpu.vector_store %arg5[%c0_18, %c0_19], %42 {strides = array<i32>} : memref<16x128xf32, #tpu.memory_space<vmem>>, vector<16x128xf32>,
    %c0_20 = arith.constant 0 : index
    %c0_21 = arith.constant 0 : index
    %44 = vector.load %arg6[%c0_20, %c0_21] : memref<16x128xf32, #tpu.memory_space<vmem>>, vector<16x128xf32>
    %45 = arith.addf %44, %37 : vector<16x128xf32>
    %c0_22 = arith.constant 0 : index
    %c0_23 = arith.constant 0 : index
    %46 = vector.load %arg6[%c0_22, %c0_23] : memref<16x128xf32, #tpu.memory_space<vmem>>, vector<16x128xf32>
    tpu.vector_store %arg6[%c0_22, %c0_23], %45 {strides = array<i32>} : memref<16x128xf32, #tpu.memory_space<vmem>>, vector<16x128xf32>,
    return
  }
  func.func @transform_0(%arg0: i32, %arg1: i32) -> (i32, i32) {
    %c0_i32 = arith.constant 0 : i32
    return %arg0, %arg1 : i32, i32
  }
  func.func @transform_1(%arg0: i32, %arg1: i32) -> (i32, i32) {
    %c0_i32 = arith.constant 0 : i32
    return %arg0, %arg1 : i32, i32
  }
  func.func @transform_2(%arg0: i32, %arg1: i32) -> (i32, i32) {
    %c0_i32 = arith.constant 0 : i32
    %c0_i32_0 = arith.constant 0 : i32
    return %arg0, %c0_i32 : i32, i32
  }
  func.func @transform_3(%arg0: i32, %arg1: i32) -> (i32, i32) {
    %c0_i32 = arith.constant 0 : i32
    %c0_i32_0 = arith.constant 0 : i32
    return %arg0, %c0_i32 : i32, i32
  }
  func.func @transform_4(%arg0: i32, %arg1: i32) -> (i32, i32) {
    %c0_i32 = arith.constant 0 : i32
    %c0_i32_0 = arith.constant 0 : i32
    return %arg0, %c0_i32 : i32, i32
  }
}

</mosaic_0001>

<bundles_post_ra>
// kernel: tpu_custom_call.1
= control target key start
LH: loop header
LB: loop body
LE: loop exit
PB: predicated region body
PF: predicated region fallthrough
CT: control target
= control target key end

     0   :  { %10 = vsyncpa [#allocation3], 0  ;;  %s437_s0 = inlined_call_operand.hbm [shape: f32[16,128], index: 0, kind: input, shape index: {}]   ;;  %s438_s1 = inlined_call_operand.hbm [shape: bf16[16,128], index: 1, kind: input, shape index: {}]   ;;  %s439_s2 = inlined_call_operand.hbm [shape: f32[16,128], index: 2, kind: output, shape index: {0}]   ;;  %s440_s3 = inlined_call_operand.hbm [shape: f32[16,128], index: 3, kind: output, shape index: {1}]   ;;  %s441_s4 = inlined_call_operand.hbm [shape: f32[16,128], index: 4, kind: output, shape index: {2}]  }
   0x1   :  { %11 = vsyncpa [#allocation6], 0 }
   0x2   :  { %12 = vsyncpa [#allocation4], 0 }
   0x3   :  { %13 = vsyncpa [#allocation9], 0  ;;  %s18_s17 = sshll.u32 %s437_s0, 4  ;;  %s373_s18 = smov [#allocation2]   ;;  %s19_s17 = int_to_ptr.hbm [resolvable:$true] %s18_s17 }
   0x4   :  { %s20_s19 = sshll.u32 %s373_s18, 4  ;;  %s31_s22 = sshll.u32 %s438_s1, 4  ;;  %s21_s19 = int_to_ptr.vmem [resolvable:$true] %s20_s19  ;;  %s32_s22 = int_to_ptr.hbm [resolvable:$true] %s31_s22 }
   0x5   :  { %s374_s23 = smov 128   ;;  %s375_s24 = smov 8  }
   0x6   :  { %26 = dma.hbm_to_vmem [thread:$0]  %s19_s17, 256, %s21_s19, [#allocation3], %s374_s23, %s374_s23, %s375_s24  }
   0x7   :  { %s376_s25 = smov [#allocation5]   ;;  %s377_s27 = smov 64  }
   0x8   :  { %s33_s26 = sshll.u32 %s376_s25, 4  ;;  %s378_s0 = smov 4   ;;  %s34_s26 = int_to_ptr.vmem [resolvable:$true] %s33_s26 }
   0x9   :  { %39 = dma.hbm_to_vmem [thread:$0]  %s32_s22, 128, %s34_s26, [#allocation6], %s377_s27, %s377_s27, %s378_s0  }
   0xa   :  { %365 = dma.done.wait [#allocation3], 256  }
   0xb   :  { %366 = vsyncadd [#allocation3], 4294967040 }
   0xc   :  { %367 = dma.done.wait [#allocation6], 128  }
   0xd   :  { %368 = vsyncadd [#allocation6], 4294967168  ;;  %v58_v0 = vld [vmem:[#allocation2] sm:$0xff]  ;;  %v59_v1 = vld [vmem:[#allocation2 + $0x8] sm:$0xff]  ;;  %s379_s1 = smov [#allocation7]   ;;  %s166_s5 = sshll.u32 %s439_s2, 4  ;;  %s167_s5 = int_to_ptr.hbm [resolvable:$true] %s166_s5 }
   0xe   :  { %v215_v2 = vmul.f32 -1.442695, %v58_v0  ;;  %v216_v3 = vmul.f32 -1.442695, %v59_v1  ;;  %v220_v15 = vld [vmem:[#allocation5] sm:$0xff]   ;;  %s416_s28 = sshll.u32 %s379_s1, 4  ;;  %s165_s28 = int_to_ptr.vmem [resolvable:$true] %s416_s28 }
   0xf   :  { %v221_v21 = vunpack.c.l.bf16 %v220_v15  ;;  %v222_v25 = vunpack.c.h.bf16 %v220_v15  ;;  %s380_s6 = smov [#allocation8]   ;;  %s179_s10 = sshll.u32 %s440_s3, 4  ;;  %s180_s10 = int_to_ptr.hbm [resolvable:$true] %s179_s10 }
  0x10   :  { %233 = vpow2.f32 %v215_v2  ;;  %s177_s7 = sshll.u32 %s380_s6, 4  ;;  %s381_s2 = smov [#allocation10]   ;;  %s178_s7 = int_to_ptr.vmem [resolvable:$true] %s177_s7 }
  0x11   :  { %235 = vpow2.f32 %v216_v3  ;;  %v106_v28 = vmul.f32 %v221_v21, %v221_v21  ;;  %v107_v29 = vmul.f32 %v222_v25, %v222_v25  ;;  %vm112_vm8 = vcmp.eq.f32.partialorder %v221_v21, 1.0  ;;  %s190_s3 = sshll.u32 %s381_s2, 4  ;;  %s192_s13 = sshll.u32 %s441_s4, 4  ;;  %s191_s3 = int_to_ptr.vmem [resolvable:$true] %s190_s3  ;;  %s193_s13 = int_to_ptr.hbm [resolvable:$true] %s192_s13 }
  0x12   :  { %v217_v32 = vadd.f32 -1.0, %v221_v21  ;;  %vm113_vm9 = vcmp.eq.f32.partialorder %v222_v25, 1.0  ;;  %v218_v42 = vadd.f32 -1.0, %v222_v25 }
  0x16   :  { %v234_v4 = vpop.eup %233 }
  0x17   :  { %v236_v5 = vpop.eup %235  ;;  %v66_v6 = vadd.f32 1.0, %v234_v4 }
  0x18   :  { %v67_v7 = vadd.f32 1.0, %v236_v5 }
  0x19   :  { %237 = vrcp.f32 %v66_v6  ;;  %vm73_vm0 = vweird.f32 %v66_v6  ;;  %v79_v11 = vand.u32 2147483648, %v66_v6  ;;  %v77_v14 = vand.u32 2147483647, %v66_v6 }
  0x1a   :  { %239 = vrcp.f32 %v67_v7  ;;  %v94_v16 = vand.u32 2147483648, %v67_v7  ;;  %vm88_vm2 = vweird.f32 %v67_v7  ;;  %v92_v18 = vand.u32 2147483647, %v67_v7 }
  0x1b   :  { %v80_v20 = vor.u32 1.1754944e-38, %v79_v11  ;;  %vm78_vm5 = vcmp.eq.f32.partialorder %v77_v14, 8.507059e+37 }
  0x1c   :  { %v95_v24 = vor.u32 1.1754944e-38, %v94_v16  ;;  %vm93_vm7 = vcmp.eq.f32.partialorder %v92_v18, 8.507059e+37 }
  0x1f   :  { %v238_v8 = vpop.eup %237 }
  0x20   :  { %v240_v9 = vpop.eup %239  ;;  %v69_v10 = vmul.f32 %v238_v8, %v66_v6  ;;  %vm74_vm1 = vweird.f32 %v238_v8 }
  0x21   :  { %v84_v12 = vmul.f32 %v240_v9, %v67_v7  ;;  %vm89_vm3 = vweird.f32 %v240_v9  ;;  %vm75_vm4 = vmor %vm73_vm0, %vm74_vm1 }
  0x22   :  { %v70_v13 = vsub.f32 1.0, %v69_v10  ;;  %vm90_vm6 = vmor %vm88_vm2, %vm89_vm3 }
  0x23   :  { %v85_v17 = vsub.f32 1.0, %v84_v12 }
  0x24   :  { %v71_v19 = vmul.f32 %v238_v8, %v70_v13 }
  0x25   :  { %v86_v22 = vmul.f32 %v240_v9, %v85_v17 }
  0x26   :  { %v72_v23 = vadd.f32 %v238_v8, %v71_v19 }
  0x27   :  { %v87_v26 = vadd.f32 %v240_v9, %v86_v22 }
  0x28   :  { %v76_v27 = vsel %vm75_vm4, %v238_v8, %v72_v23 }
  0x29   :  { %v81_v30 = vsel %vm78_vm5, %v80_v20, %v76_v27  ;;  %v91_v31 = vsel %vm90_vm6, %v240_v9, %v87_v26 }
  0x2a   :  { %v104_v33 = vmul.f32 %v81_v30, %v81_v30  ;;  %v96_v34 = vsel %vm93_vm7, %v95_v24, %v91_v31  ;;  %v102_v35 = vmul.f32 %v221_v21, %v81_v30  ;;  %v110_v36 = vsub.f32 1.0, %v81_v30 }
  0x2b   :  { %v105_v37 = vmul.f32 %v96_v34, %v96_v34  ;;  %v103_v38 = vmul.f32 %v222_v25, %v96_v34  ;;  %v111_v39 = vsub.f32 1.0, %v96_v34 }
  0x2c   :  { %v108_v40 = vadd.f32 %v106_v28, %v104_v33  ;;  %v114_v41 = vsel %vm112_vm8, %v81_v30, %v110_v36  ;;  %v122_v43 = vmul.f32 %v221_v21, %v104_v33  ;;  %v118_v45 = vmul.f32 %v110_v36, %v110_v36  ;;  %146 = vst [vmem:[#allocation7] sm:$0xff] %v102_v35 }
  0x2d   :  { %v109_v44 = vadd.f32 %v107_v29, %v105_v37  ;;  %v132_v46 = vadd.f32 0.001, %v114_v41  ;;  %v115_v47 = vsel %vm113_vm9, %v96_v34, %v111_v39  ;;  %v123_v48 = vmul.f32 %v222_v25, %v105_v37  ;;  %147 = vst [vmem:[#allocation7 + $0x8] sm:$0xff] %v103_v38 }
  0x2e   :  { %v120_v49 = vmul.f32 %v217_v32, %v118_v45  ;;  %v119_v50 = vmul.f32 %v111_v39, %v111_v39  ;;  %152 = vst [vmem:[#allocation8] sm:$0xff] %v108_v40  ;;  %v133_v51 = vadd.f32 0.001, %v115_v47  ;;  %172 = dma.vmem_to_hbm [thread:$0]  %s165_s28, 256, %s167_s5, [#allocation4], %s374_s23, %s374_s23, %s375_s24  }
  0x2f   :  { %241 = vlog2.f32 %v132_v46  ;;  %153 = vst [vmem:[#allocation8 + $0x8] sm:$0xff] %v109_v44  ;;  %vm130_vm10 = vcmp.lt.f32.partialorder %v114_v41, 0.3  ;;  %vm131_vm11 = vcmp.lt.f32.partialorder %v115_v47, 0.3 }
  0x30   :  { %v124_v52 = vsub.f32 %v120_v49, %v122_v43  ;;  %v121_v53 = vmul.f32 %v218_v42, %v119_v50  ;;  %243 = vlog2.f32 %v133_v51  ;;  %185 = dma.vmem_to_hbm [thread:$0]  %s178_s7, 256, %s180_s10, [#allocation9], %s374_s23, %s374_s23, %s375_s24  }
  0x32   :  { %v126_v54 = vmul.f32 5.5555553, %v124_v52  ;;  %v125_v55 = vsub.f32 %v121_v53, %v123_v48 }
  0x34   :  { %v127_v56 = vmul.f32 5.5555553, %v125_v55  ;;  %v128_v58 = vadd.f32 1.7039728, %v126_v54 }
  0x35   :  { %v242_v57 = vpop.eup %241 }
  0x36   :  { %v135_v59 = vmul.f32 0.6931472, %v242_v57  ;;  %v244_v60 = vpop.eup %243  ;;  %v129_v62 = vadd.f32 1.7039728, %v127_v56 }
  0x37   :  { %v137_v63 = vmul.f32 0.6931472, %v244_v60 }
  0x38   :  { %v138_v61 = vsub.f32 0.0, %v135_v59 }
  0x39   :  { %v139_v1 = vsub.f32 0.0, %v137_v63 }
  0x3a   :  { %v140_v0 = vsel %vm130_vm10, %v128_v58, %v138_v61 }
  0x3b   :  { %v141_v2 = vsel %vm131_vm11, %v129_v62, %v139_v1  ;;  %158 = vst [vmem:[#allocation10] sm:$0xff] %v140_v0 }
  0x3c   :  { %159 = vst [vmem:[#allocation10 + $0x8] sm:$0xff] %v141_v2 }
  0x3d   :  { %198 = dma.vmem_to_hbm [thread:$0]  %s191_s3, 256, %s193_s13, [#allocation9], %s374_s23, %s374_s23, %s375_s24  }
  0x3e   :  { %369 = dma.done.wait [#allocation4], 256  }
  0x3f   :  { %370 = vsyncadd [#allocation4], 4294967040 }
  0x40   :  { %371 = dma.done.wait [#allocation9], 512  }
  0x41   :  { %372 = vsyncadd [#allocation9], 4294966784 }
  0x42   :  { %211 = vsyncpa [#allocation3], 1 }
  0x43   :  { %212 = vsyncpa [#allocation6], 1 }
  0x44   :  { %213 = vsyncpa [#allocation4], 1 }
  0x45   :  { %214 = vsyncpa [#allocation9], 1 }

</bundles_post_ra>
